<compile_context>
chip_gen: v7x
topology: tpu7x:2x2x1
jax: 0.10.0
libtpu: 0.0.40
codegen_flags: <defaults>
</compile_context>

<pallas_src>
import functools

import jax
import jax.numpy as jnp
from jax.experimental import pallas as pl
from jax.experimental.pallas import tpu as pltpu

LAYERS = [64, 32, 16]   # [L0, L1, L2]


def _round_up(n, m):
    return ((n + m - 1) // m) * m


def cae_kernel(x_ref, c_ref,
               we1_ref, be1_ref, we2_ref, be2_ref,
               wd1h_ref, wd1c_ref, bd1_ref, wd2_ref, bd2_ref,
               out_ref):
    # ---- Encoder (MXU matmuls, f32 accumulation) ----
    h = jnp.dot(x_ref[...], we1_ref[...], preferred_element_type=jnp.float32) + be1_ref[...]
    h = jnp.maximum(h, 0.0)
    h = jnp.dot(h, we2_ref[...], preferred_element_type=jnp.float32) + be2_ref[...]
    h = jnp.maximum(h, 0.0)

    # ---- Decoder ----
    # ReLU(hstack([h, c])) == hstack([h, ReLU(c)]) because h >= 0 already, and
    # hstack(.) @ Wd1^T splits into  h @ Wd1h^T  +  ReLU(c) * wd1c_row.
    c = jnp.maximum(c_ref[...], 0.0)                               # (TN, 1)
    g = (jnp.dot(h, wd1h_ref[...], preferred_element_type=jnp.float32)
         + c * wd1c_ref[...] + bd1_ref[...])
    g = jnp.maximum(g, 0.0)
    out = jnp.dot(g, wd2_ref[...], preferred_element_type=jnp.float32) + bd2_ref[...]
    out_ref[...] = jnp.maximum(out, 0.0)                           # trailing decoder ReLU


def init_params(key, layers):
    """PyTorch-style uniform(-1/sqrt(fan_in), 1/sqrt(fan_in)) init, deterministic."""
    l0, l1, l2 = layers
    ks = jax.random.split(key, 8)

    def uni(k, shape, fan_in):
        b = 1.0 / jnp.sqrt(jnp.float32(fan_in))
        return jax.random.uniform(k, shape, jnp.float32, -b, b)

    return dict(
        we1=uni(ks[0], (l1, l0), l0), be1=uni(ks[1], (l1,), l0),              # Linear(L0 -> L1)
        we2=uni(ks[2], (l2, l1), l1), be2=uni(ks[3], (l2,), l1),              # Linear(L1 -> L2)
        wd1=uni(ks[4], (l1, l2 + 1), l2 + 1), bd1=uni(ks[5], (l1,), l2 + 1),  # Linear(L2+1 -> L1)
        wd2=uni(ks[6], (l0, l1), l1), bd2=uni(ks[7], (l0,), l1),              # Linear(L1 -> L0)
    )


def prepare_kernel_params(p):
    """One-time prep: (in,out)-layout weights, 2-D biases, and the split of the
    conditional decoder weight into its (L2,L1) part + (1,L1) c-column row."""
    l2 = p["we2"].shape[0]
    return (
        jnp.asarray(p["we1"].T),                       # (L0, L1)
        jnp.asarray(p["be1"]).reshape(1, -1),          # (1, L1)
        jnp.asarray(p["we2"].T),                       # (L1, L2)
        jnp.asarray(p["be2"]).reshape(1, -1),          # (1, L2)
        jnp.asarray(p["wd1"][:, :l2].T),               # (L2, L1)
        jnp.asarray(p["wd1"][:, l2]).reshape(1, -1),   # (1, L1)  column that multiplies c
        jnp.asarray(p["bd1"]).reshape(1, -1),          # (1, L1)
        jnp.asarray(p["wd2"].T),                       # (L1, L0)
        jnp.asarray(p["bd2"]).reshape(1, -1),          # (1, L0)
    )


@functools.partial(jax.jit, static_argnames=("tn",))
def cae_forward(x, c, kparams, tn=256):
    """x: (N, L0) f32, c: (N, 1) f32  ->  (N, L0) f32."""
    N, L0 = x.shape
    we1t, be1, we2t, be2, wd1ht, wd1c, bd1, wd2t, bd2 = kparams
    L1 = we1t.shape[1]
    L2 = we2t.shape[1]

    TN = min(tn, _round_up(N, 8))          # batch tile (sublane-aligned)
    Npad = _round_up(N, TN)
    if Npad != N:
        x = jnp.pad(x, ((0, Npad - N), (0, 0)))
        c = jnp.pad(c, ((0, Npad - N), (0, 0)))

    const = lambda shape: pl.BlockSpec(shape, lambda i: (0, 0))   # weights stay resident

    out = pl.pallas_call(
        cae_kernel,
        out_shape=jax.ShapeDtypeStruct((Npad, L0), jnp.float32),
        grid=(Npad // TN,),
        in_specs=[
            pl.BlockSpec((TN, L0), lambda i: (i, 0)),             # x tile
            pl.BlockSpec((TN, 1), lambda i: (i, 0)),              # c tile
            const((L0, L1)), const((1, L1)),                      # we1^T, be1
            const((L1, L2)), const((1, L2)),                      # we2^T, be2
            const((L2, L1)), const((1, L1)), const((1, L1)),      # wd1h^T, wd1c row, bd1
            const((L1, L0)), const((1, L0)),                      # wd2^T, bd2
        ],
        out_specs=pl.BlockSpec((TN, L0), lambda i: (i, 0)),
        compiler_params=pltpu.CompilerParams(dimension_semantics=("parallel",)),
    )(x, c, we1t, be1, we2t, be2, wd1ht, wd1c, bd1, wd2t, bd2)
    return out[:N]


def cae_reference(x, c, p):
    """Pure-JAX reference mirroring the PyTorch CAE.forward exactly."""
    h = jnp.maximum(x @ p["we1"].T + p["be1"], 0.0)
    h = jnp.maximum(h @ p["we2"].T + p["be2"], 0.0)
    z = jnp.maximum(jnp.concatenate([h, c], axis=1), 0.0)   # hstack + leading decoder ReLU
    g = jnp.maximum(z @ p["wd1"].T + p["bd1"], 0.0)
    return jnp.maximum(g @ p["wd2"].T + p["bd2"], 0.0)


if __name__ == "__main__":
    key = jax.random.PRNGKey(0)
    kx, kc, kp, kx2, kc2 = jax.random.split(key, 5)

    params = init_params(kp, LAYERS)
    kparams = prepare_kernel_params(params)   # one-time host prep (no per-call transposes)

    # Small demo batch.
    N = 8
    x = jax.random.normal(kx, (N, LAYERS[0]), jnp.float32)
    c = jax.random.normal(kc, (N, 1), jnp.float32)
    out = jax.block_until_ready(cae_forward(x, c, kparams))
    ref = jax.block_until_ready(cae_reference(x, c, params))
    assert out.shape == (N, LAYERS[0]), out.shape
    assert jnp.allclose(out, ref, atol=1e-5, rtol=1e-5), float(jnp.max(jnp.abs(out - ref)))

    # Larger batch exercising the batch grid + padding path (TN=256, 2 grid steps).
    N2 = 300
    x2 = jax.random.normal(kx2, (N2, LAYERS[0]), jnp.float32)
    c2 = jax.random.normal(kc2, (N2, 1), jnp.float32)
    out2 = jax.block_until_ready(cae_forward(x2, c2, kparams))
    ref2 = jax.block_until_ready(cae_reference(x2, c2, params))
    assert out2.shape == (N2, LAYERS[0]), out2.shape
    assert jnp.allclose(out2, ref2, atol=1e-4, rtol=1e-4), float(jnp.max(jnp.abs(out2 - ref2)))

    print("KERNEL_OK")
</pallas_src>

<mosaic_0001>
module attributes {stable_mosaic.version = 11 : i64} {
  func.func @cae_kernel(%arg0: i32, %arg1: memref<8x64xf32, #tpu.memory_space<vmem>>, %arg2: memref<8x1xf32, #tpu.memory_space<vmem>>, %arg3: memref<64x32xf32, #tpu.memory_space<vmem>>, %arg4: memref<1x32xf32, #tpu.memory_space<vmem>>, %arg5: memref<32x16xf32, #tpu.memory_space<vmem>>, %arg6: memref<1x16xf32, #tpu.memory_space<vmem>>, %arg7: memref<16x32xf32, #tpu.memory_space<vmem>>, %arg8: memref<1x32xf32, #tpu.memory_space<vmem>>, %arg9: memref<1x32xf32, #tpu.memory_space<vmem>>, %arg10: memref<32x64xf32, #tpu.memory_space<vmem>>, %arg11: memref<1x64xf32, #tpu.memory_space<vmem>>, %arg12: memref<8x64xf32, #tpu.memory_space<vmem>>) attributes {dimension_semantics = [#tpu.dimension_semantics<parallel>], iteration_bounds = array<i64: 1>, scalar_prefetch = 0 : i64, scratch_operands = 0 : i64, tpu.core_type = #tpu.core_type<tc>, window_params = [{transform_indices = @transform_0, window_bounds = array<i64: 8, 64>}, {transform_indices = @transform_1, window_bounds = array<i64: 8, 1>}, {pipeline_mode = #tpu.pipeline_mode<synchronous>, transform_indices = @transform_2, window_bounds = array<i64: 64, 32>}, {pipeline_mode = #tpu.pipeline_mode<synchronous>, transform_indices = @transform_3, window_bounds = array<i64: 1, 32>}, {pipeline_mode = #tpu.pipeline_mode<synchronous>, transform_indices = @transform_4, window_bounds = array<i64: 32, 16>}, {pipeline_mode = #tpu.pipeline_mode<synchronous>, transform_indices = @transform_5, window_bounds = array<i64: 1, 16>}, {pipeline_mode = #tpu.pipeline_mode<synchronous>, transform_indices = @transform_6, window_bounds = array<i64: 16, 32>}, {pipeline_mode = #tpu.pipeline_mode<synchronous>, transform_indices = @transform_7, window_bounds = array<i64: 1, 32>}, {pipeline_mode = #tpu.pipeline_mode<synchronous>, transform_indices = @transform_8, window_bounds = array<i64: 1, 32>}, {pipeline_mode = #tpu.pipeline_mode<synchronous>, transform_indices = @transform_9, window_bounds = array<i64: 32, 64>}, {pipeline_mode = #tpu.pipeline_mode<synchronous>, transform_indices = @transform_10, window_bounds = array<i64: 1, 64>}, {transform_indices = @transform_11, window_bounds = array<i64: 8, 64>}]} {
    %c0 = arith.constant 0 : index
    %c0_0 = arith.constant 0 : index
    %0 = vector.load %arg1[%c0, %c0_0] : memref<8x64xf32, #tpu.memory_space<vmem>>, vector<8x64xf32>
    %c0_1 = arith.constant 0 : index
    %c0_2 = arith.constant 0 : index
    %1 = vector.load %arg3[%c0_1, %c0_2] : memref<64x32xf32, #tpu.memory_space<vmem>>, vector<64x32xf32>
    %cst = arith.constant dense<0.000000e+00> : vector<8x32xf32>
    %2 = tpu.matmul %0, %1, %cst {dimension_numbers = #tpu.dot_dimension_numbers<[1], [0], [0], [1], [0, 0, 1, 1], [], []>} : vector<8x64xf32>, vector<64x32xf32>, vector<8x32xf32> -> vector<8x32xf32>
    %c0_3 = arith.constant 0 : index
    %c0_4 = arith.constant 0 : index
    %3 = vector.load %arg4[%c0_3, %c0_4] : memref<1x32xf32, #tpu.memory_space<vmem>>, vector<1x32xf32>
    %4 = vector.broadcast %3 : vector<1x32xf32> to vector<8x32xf32>
    %5 = arith.addf %2, %4 : vector<8x32xf32>
    %cst_5 = arith.constant 0.000000e+00 : f32
    %6 = vector.broadcast %cst_5 : f32 to vector<8x32xf32>
    %7 = arith.maximumf %5, %6 : vector<8x32xf32>
    %c0_6 = arith.constant 0 : index
    %c0_7 = arith.constant 0 : index
    %8 = vector.load %arg5[%c0_6, %c0_7] : memref<32x16xf32, #tpu.memory_space<vmem>>, vector<32x16xf32>
    %cst_8 = arith.constant dense<0.000000e+00> : vector<8x16xf32>
    %9 = tpu.matmul %7, %8, %cst_8 {dimension_numbers = #tpu.dot_dimension_numbers<[1], [0], [0], [1], [0, 0, 1, 1], [], []>} : vector<8x32xf32>, vector<32x16xf32>, vector<8x16xf32> -> vector<8x16xf32>
    %c0_9 = arith.constant 0 : index
    %c0_10 = arith.constant 0 : index
    %10 = vector.load %arg6[%c0_9, %c0_10] : memref<1x16xf32, #tpu.memory_space<vmem>>, vector<1x16xf32>
    %11 = vector.broadcast %10 : vector<1x16xf32> to vector<8x16xf32>
    %12 = arith.addf %9, %11 : vector<8x16xf32>
    %cst_11 = arith.constant 0.000000e+00 : f32
    %13 = vector.broadcast %cst_11 : f32 to vector<8x16xf32>
    %14 = arith.maximumf %12, %13 : vector<8x16xf32>
    %c0_12 = arith.constant 0 : index
    %c0_13 = arith.constant 0 : index
    %15 = vector.load %arg2[%c0_12, %c0_13] : memref<8x1xf32, #tpu.memory_space<vmem>>, vector<8x1xf32>
    %cst_14 = arith.constant 0.000000e+00 : f32
    %16 = vector.broadcast %cst_14 : f32 to vector<8x1xf32>
    %17 = arith.maximumf %15, %16 : vector<8x1xf32>
    %c0_15 = arith.constant 0 : index
    %c0_16 = arith.constant 0 : index
    %18 = vector.load %arg7[%c0_15, %c0_16] : memref<16x32xf32, #tpu.memory_space<vmem>>, vector<16x32xf32>
    %cst_17 = arith.constant dense<0.000000e+00> : vector<8x32xf32>
    %19 = tpu.matmul %14, %18, %cst_17 {dimension_numbers = #tpu.dot_dimension_numbers<[1], [0], [0], [1], [0, 0, 1, 1], [], []>} : vector<8x16xf32>, vector<16x32xf32>, vector<8x32xf32> -> vector<8x32xf32>
    %c0_18 = arith.constant 0 : index
    %c0_19 = arith.constant 0 : index
    %20 = vector.load %arg8[%c0_18, %c0_19] : memref<1x32xf32, #tpu.memory_space<vmem>>, vector<1x32xf32>
    %21 = vector.broadcast %17 : vector<8x1xf32> to vector<8x32xf32>
    %22 = vector.broadcast %20 : vector<1x32xf32> to vector<8x32xf32>
    %23 = arith.mulf %21, %22 : vector<8x32xf32>
    %24 = arith.addf %19, %23 : vector<8x32xf32>
    %c0_20 = arith.constant 0 : index
    %c0_21 = arith.constant 0 : index
    %25 = vector.load %arg9[%c0_20, %c0_21] : memref<1x32xf32, #tpu.memory_space<vmem>>, vector<1x32xf32>
    %26 = vector.broadcast %25 : vector<1x32xf32> to vector<8x32xf32>
    %27 = arith.addf %24, %26 : vector<8x32xf32>
    %cst_22 = arith.constant 0.000000e+00 : f32
    %28 = vector.broadcast %cst_22 : f32 to vector<8x32xf32>
    %29 = arith.maximumf %27, %28 : vector<8x32xf32>
    %c0_23 = arith.constant 0 : index
    %c0_24 = arith.constant 0 : index
    %30 = vector.load %arg10[%c0_23, %c0_24] : memref<32x64xf32, #tpu.memory_space<vmem>>, vector<32x64xf32>
    %cst_25 = arith.constant dense<0.000000e+00> : vector<8x64xf32>
    %31 = tpu.matmul %29, %30, %cst_25 {dimension_numbers = #tpu.dot_dimension_numbers<[1], [0], [0], [1], [0, 0, 1, 1], [], []>} : vector<8x32xf32>, vector<32x64xf32>, vector<8x64xf32> -> vector<8x64xf32>
    %c0_26 = arith.constant 0 : index
    %c0_27 = arith.constant 0 : index
    %32 = vector.load %arg11[%c0_26, %c0_27] : memref<1x64xf32, #tpu.memory_space<vmem>>, vector<1x64xf32>
    %33 = vector.broadcast %32 : vector<1x64xf32> to vector<8x64xf32>
    %34 = arith.addf %31, %33 : vector<8x64xf32>
    %cst_28 = arith.constant 0.000000e+00 : f32
    %35 = vector.broadcast %cst_28 : f32 to vector<8x64xf32>
    %36 = arith.maximumf %34, %35 : vector<8x64xf32>
    %c0_29 = arith.constant 0 : index
    %c0_30 = arith.constant 0 : index
    %37 = vector.load %arg12[%c0_29, %c0_30] : memref<8x64xf32, #tpu.memory_space<vmem>>, vector<8x64xf32>
    tpu.vector_store %arg12[%c0_29, %c0_30], %36 {strides = array<i32>} : memref<8x64xf32, #tpu.memory_space<vmem>>, vector<8x64xf32>,
    return
  }
  func.func @transform_0(%arg0: i32) -> (i32, i32) {
    %c0_i32 = arith.constant 0 : i32
    %c0_i32_0 = arith.constant 0 : i32
    return %arg0, %c0_i32 : i32, i32
  }
  func.func @transform_1(%arg0: i32) -> (i32, i32) {
    %c0_i32 = arith.constant 0 : i32
    %c0_i32_0 = arith.constant 0 : i32
    return %arg0, %c0_i32 : i32, i32
  }
  func.func @transform_2(%arg0: i32) -> (i32, i32) {
    %c0_i32 = arith.constant 0 : i32
    %c0_i32_0 = arith.constant 0 : i32
    %c0_i32_1 = arith.constant 0 : i32
    return %c0_i32, %c0_i32_0 : i32, i32
  }
  func.func @transform_3(%arg0: i32) -> (i32, i32) {
    %c0_i32 = arith.constant 0 : i32
    %c0_i32_0 = arith.constant 0 : i32
    %c0_i32_1 = arith.constant 0 : i32
    return %c0_i32, %c0_i32_0 : i32, i32
  }
  func.func @transform_4(%arg0: i32) -> (i32, i32) {
    %c0_i32 = arith.constant 0 : i32
    %c0_i32_0 = arith.constant 0 : i32
    %c0_i32_1 = arith.constant 0 : i32
    return %c0_i32, %c0_i32_0 : i32, i32
  }
  func.func @transform_5(%arg0: i32) -> (i32, i32) {
    %c0_i32 = arith.constant 0 : i32
    %c0_i32_0 = arith.constant 0 : i32
    %c0_i32_1 = arith.constant 0 : i32
    return %c0_i32, %c0_i32_0 : i32, i32
  }
  func.func @transform_6(%arg0: i32) -> (i32, i32) {
    %c0_i32 = arith.constant 0 : i32
    %c0_i32_0 = arith.constant 0 : i32
    %c0_i32_1 = arith.constant 0 : i32
    return %c0_i32, %c0_i32_0 : i32, i32
  }
  func.func @transform_7(%arg0: i32) -> (i32, i32) {
    %c0_i32 = arith.constant 0 : i32
    %c0_i32_0 = arith.constant 0 : i32
    %c0_i32_1 = arith.constant 0 : i32
    return %c0_i32, %c0_i32_0 : i32, i32
  }
  func.func @transform_8(%arg0: i32) -> (i32, i32) {
    %c0_i32 = arith.constant 0 : i32
    %c0_i32_0 = arith.constant 0 : i32
    %c0_i32_1 = arith.constant 0 : i32
    return %c0_i32, %c0_i32_0 : i32, i32
  }
  func.func @transform_9(%arg0: i32) -> (i32, i32) {
    %c0_i32 = arith.constant 0 : i32
    %c0_i32_0 = arith.constant 0 : i32
    %c0_i32_1 = arith.constant 0 : i32
    return %c0_i32, %c0_i32_0 : i32, i32
  }
  func.func @transform_10(%arg0: i32) -> (i32, i32) {
    %c0_i32 = arith.constant 0 : i32
    %c0_i32_0 = arith.constant 0 : i32
    %c0_i32_1 = arith.constant 0 : i32
    return %c0_i32, %c0_i32_0 : i32, i32
  }
  func.func @transform_11(%arg0: i32) -> (i32, i32) {
    %c0_i32 = arith.constant 0 : i32
    %c0_i32_0 = arith.constant 0 : i32
    return %arg0, %c0_i32 : i32, i32
  }
}

</mosaic_0001>

<bundles_post_ra>
// kernel: cae_forward.1
= control target key start
LH: loop header
LB: loop body
LE: loop exit
PB: predicated region body
PF: predicated region fallthrough
CT: control target
= control target key end

     0   :  { %v552_v3 = vmov 0.0|0.0   ;;  %vm553_vm0 = vmmov 0   ;;  %v554_v6 = vmov 0.0   ;;  %s721_s0 = inlined_call_operand.vmem [shape: f32[8,64], index: 0, kind: input, shape index: {}]   ;;  %s722_s1 = inlined_call_operand.vmem [shape: f32[8,1], index: 1, kind: input, shape index: {}]   ;;  %s723_s2 = inlined_call_operand.vmem [shape: f32[64,32], index: 2, kind: input, shape index: {}]   ;;  %s724_s3 = inlined_call_operand.vmem [shape: f32[1,32], index: 3, kind: input, shape index: {}]   ;;  %s725_s4 = inlined_call_operand.vmem [shape: f32[32,16], index: 4, kind: input, shape index: {}]   ;;  %s726_s5 = inlined_call_operand.vmem [shape: f32[1,16], index: 5, kind: input, shape index: {}]   ;;  %s727_s6 = inlined_call_operand.vmem [shape: f32[16,32], index: 6, kind: input, shape index: {}]   ;;  %s728_s7 = inlined_call_operand.vmem [shape: f32[1,32], index: 7, kind: input, shape index: {}]   ;;  %s729_s8 = inlined_call_operand.vmem [shape: f32[1,32], index: 8, kind: input, shape index: {}]   ;;  %s730_s9 = inlined_call_operand.vmem [shape: f32[32,64], index: 9, kind: input, shape index: {}]   ;;  %s731_s10 = inlined_call_operand.vmem [shape: f32[1,64], index: 10, kind: input, shape index: {}]   ;;  %s732_s11 = inlined_call_operand.hbm [shape: f32[8,64], index: 11, kind: output, shape index: {}]  }
   0x1   :  { %v40_v0 = vld [vmem:[%s723_s2] sm:$0xff]  ;;  %v41_v1 = vld [vmem:[%s723_s2 + $0x8] sm:$0xff]  ;;  %v42_v2 = vld [vmem:[%s723_s2 + $0x10] sm:$0xff]  ;;  %495 = vmatprep.subr.bf16.mxu0 %v552_v3  ;;  %463 = vmatprep.mubr.msk.f32.mxu0 %vm553_vm0, %v554_v6 }
   0x2   :  { %v496_v4 = vpack.c.bf16 %v41_v1, %v40_v0  ;;  %v43_v5 = vld [vmem:[%s723_s2 + $0x18] sm:$0xff]  ;;  %507 = vmatprep.subr.bf16.mxu1 %v552_v3  ;;  %474 = vmatprep.mubr.msk.f32.mxu1 %vm553_vm0, %v554_v6  ;;  %v130_v8 = vld [vmem:[%s725_s4] sm:$0xff]  ;;  %v131_v9 = vld [vmem:[%s725_s4 + $0x8] sm:$0xff] }
   0x3   :  { %v499_v7 = vpack.c.bf16 %v43_v5, %v42_v2  ;;  %v44_v10 = vld [vmem:[%s723_s2 + $0x20] sm:$0xff]  ;;  %v45_v11 = vld [vmem:[%s723_s2 + $0x28] sm:$0xff]  ;;  %v508_v12 = vpack.c.bf16 %v131_v9, %v130_v8 }
   0x4   :  { %497 = vmatpush3.bf16.msra.mxu0 %v496_v4 }
   0x5   :  { %498 = vmatprep.subr.bf16.mxu0 %v552_v3 }
   0x6   :  { %16 = vsyncpa [#allocation3], 0  ;;  %509 = vmatpush3.bf16.msra.mxu1 %v508_v12  ;;  %v502_v13 = vpack.c.bf16 %v45_v11, %v44_v10  ;;  %v46_v14 = vld [vmem:[%s723_s2 + $0x30] sm:$0xff]  ;;  %v47_v15 = vld [vmem:[%s723_s2 + $0x38] sm:$0xff]  ;;  %vm55_vm1 = vcmask 523264   ;;  %vm141_vm2 = vcmask 261120  }
   0x7   :  { %510 = vmatprep.subr.bf16.mxu1 %v552_v3  ;;  %v505_v16 = vpack.c.bf16 %v47_v15, %v46_v14  ;;  %v39_v17 = vld [vmem:[%s721_s0] sm:$0xff]  ;;  %v132_v18 = vld [vmem:[%s725_s4 + $0x10] sm:$0xff]  ;;  %v133_v19 = vld [vmem:[%s725_s4 + $0x18] sm:$0xff]  ;;  %v555_v30 = vmov 0   ;;  %vm233_vm3 = vcmask 130048   ;;  %s556_s21 = smov [#allocation2]  }
   0x8   :  { %500 = vmatpush3.bf16.msra.mxu0 %v499_v7  ;;  %v511_v20 = vpack.c.bf16 %v133_v19, %v132_v18  ;;  %v416_v21 = vld [vmem:[%s724_s3] ss:$0 sm:$0xff]  ;;  %v219_v27 = vld [vmem:[%s727_s6 + $0x8] sm:$0xff]  ;;  %527 = vset.pattern.permute.xlu0 %v555_v30  ;;  %v318_v40 = vld [vmem:[%s730_s9 + $0x10] sm:$0xff] }
   0x9   :  { %501 = vmatprep.subr.bf16.mxu0 %v552_v3  ;;  %v218_v26 = vld [vmem:[%s727_s6] sm:$0xff]  ;;  %v317_v38 = vld [vmem:[%s730_s9 + $0x8] sm:$0xff]  ;;  %v319_v41 = vld [vmem:[%s730_s9 + $0x18] sm:$0xff] }
   0xa   :  { %512 = vmatpush3.bf16.msra.mxu1 %v511_v20  ;;  %v514_v28 = vpack.c.bf16 %v219_v27, %v218_v26  ;;  %v216_v29 = vld [vmem:[%s722_s1] sm:$0xff]  ;;  %v520_v42 = vpack.c.bf16 %v319_v41, %v318_v40 }
   0xb   :  { %513 = vmatprep.subr.bf16.mxu1 %v552_v3  ;;  %v217_v31 = vmax.f32 %v216_v29, 0.0  ;;  %v418_v32 = vld [vmem:[%s726_s5] ss:$0 sm:$0xff] }
   0xc   :  { %503 = vmatpush3.bf16.msra.mxu0 %v502_v13  ;;  %v316_v37 = vld [vmem:[%s730_s9] sm:$0xff] }
   0xd   :  { %504 = vmatprep.subr.bf16.mxu0 %v552_v3  ;;  %223 = vperm.xlu0 %527, %v217_v31   ;;  %v517_v39 = vpack.c.bf16 %v317_v38, %v316_v37  ;;  %v420_v43 = vld [vmem:[%s728_s7] ss:$0 sm:$0xff]  ;;  %s408_s7 = sshll.u32 %s556_s21, 4  ;;  %s409_s7 = int_to_ptr.vmem [resolvable:$true] %s408_s7 }
   0xe   :  { %v422_v47 = vld [vmem:[%s729_s8] ss:$0 sm:$0xff]  ;;  %s528_s8 = scalar_lea.vmem %s409_s7, 128  ;;  %p533_p1 = scmp.lt.s32.totalorder %s409_s7, %s409_s7 }
   0xf   :  { %v423_v52 = vld [vmem:[%s731_s10] ss:$0 sm:$0xff]  ;;  %p529_p0 = scmp.ne.s32.totalorder %s409_s7, %s528_s8  ;;  %p534_p2 = scmp.lt.s32.totalorder %s528_s8, %s528_s8 }
  0x10   :  { %506 = vmatpush3.bf16.msra.mxu0 %v505_v16 }
  0x11   :  { %p535_p3 = por %p534_p2, %p533_p1 }
  0x13   :  { %464 = vmatmul.mubr.msk.f32.vlgmr.msra.gmra.mrb[0].mxu0 %vm55_vm1, %v39_v17  ;;  %p536_p4 = pnand %p535_p3, %p529_p0 }
  0x8c   :  { %v224_v44 = vpop.permute.xlu0 %223 }
  0x8d   :  { %v232_v45 = vmul.f32 %v420_v43, %v224_v44 }
  0xe6   :  { %v125_v22 = vpop.f32.mrb[0].mxu0 }
  0xe7   :  { %v126_v23 = vadd.f32 %v416_v21, %v125_v22  ;;  %v465_v24 = vpop.f32.mrb[1].mxu0 }
  0xe9   :  { %v129_v25 = vmax.f32 %v126_v23, 0.0 }
  0xeb   :  { %475 = vmatmul.mubr.msk.f32.vlgmr.msra.gmra.mrb[0].mxu1 %vm141_vm2, %v129_v25 }
  0xec   :  { %481 = vmatprep.mubr.msk.f32.mxu1 %vm553_vm0, %v554_v6  ;;  %515 = vmatpush3.bf16.msra.mxu1 %v514_v28 }
  0xed   :  { %516 = vmatprep.subr.bf16.mxu1 %v552_v3 }
 0x1be   :  { %v211_v33 = vpop.f32.mrb[0].mxu1 }
 0x1bf   :  { %v212_v34 = vadd.f32 %v418_v32, %v211_v33  ;;  %v476_v35 = vpop.f32.mrb[1].mxu1 }
 0x1c1   :  { %v215_v36 = vmax.f32 %v212_v34, 0.0 }
 0x1c3   :  { %482 = vmatmul.mubr.msk.f32.vlgmr.msra.gmra.mrb[2].mxu1 %vm233_vm3, %v215_v36 }
 0x1c4   :  { %492 = vmatprep.mubr.msk.f32.mxu1 %vm553_vm0, %v554_v6  ;;  %518 = vmatpush3.bf16.msra.mxu1 %v517_v39 }
 0x1c5   :  { %519 = vmatprep.subr.bf16.mxu1 %v552_v3 }
 0x1c8   :  { %521 = vmatpush3.bf16.msra.mxu1 %v520_v42 }
 0x296   :  { %v303_v46 = vpop.f32.mrb[2].mxu1 }
 0x297   :  { %v304_v48 = vadd.f32 %v303_v46, %v232_v45  ;;  %v483_v49 = vpop.f32.mrb[3].mxu1 }
 0x299   :  { %v314_v50 = vadd.f32 %v422_v47, %v304_v48 }
 0x29b   :  { %v315_v51 = vmax.f32 %v314_v50, 0.0 }
 0x29d   :  { %493 = vmatmul.mubr.msk.f32.vlgmr.msra.gmra.mrb[4].mxu1 %vm141_vm2, %v315_v51 }
 0x370   :  { %v396_v53 = vpop.f32.mrb[4].mxu1 }
 0x371   :  { %v397_v54 = vadd.f32 %v423_v52, %v396_v53  ;;  %v494_v55 = vpop.f32.mrb[5].mxu1 }
 0x373   :  { %v400_v56 = vmax.f32 %v397_v54, 0.0 }
 0x375   :  { %401 = vst.msk [vmem:[#allocation2] sm:$0xff] %vm55_vm1, %v400_v56 }
 0x376   :  { %539 = shalt.err (!%p536_p4)
}
 0x377   :  { %s540_s10 = scalar_lea.hbm %s732_s11, 128 }
 0x378   :  { %p541_p5 = scmp.ne.s32.totalorder %s732_s11, %s540_s10  ;;  %p544_p6 = scmp.lt.u32.totalorder %s540_s10, %s732_s11 }
 0x37a   :  { %p546_p7 = pnand %p544_p6, %p541_p5 }
 0x37c   :  { %549 = shalt.err (!%p546_p7)
}
 0x37d   :  { %411 = dma.vmem_to_hbm [thread:$0]  %s409_s7, 128, %s732_s11, [#allocation3]  }
 0x37e   :  { %550 = dma.done.wait [#allocation3], 128  }
 0x37f   :  { %551 = vsyncadd [#allocation3], 4294967168 }
 0x380   :  { %415 = vsyncpa [#allocation3], 1 }

</bundles_post_ra>
